<compile_context>
chip_gen: v7x
topology: tpu7x:2x2x1
jax: 0.10.0
libtpu: 0.0.40
codegen_flags: <defaults>
</compile_context>

<pallas_src>
import functools
import math

import jax
import jax.numpy as jnp
from jax.experimental import pallas as pl
from jax.experimental.pallas import tpu as pltpu


# ----------------------------------------------------------------------------
# Buffer construction (mirrors torch __init__ / register_buffer)
# ----------------------------------------------------------------------------
def make_positional_encoding_table(d_model: int, max_len: int = 5000) -> jnp.ndarray:
    """Builds the (max_len, 1, d_model) sinusoidal table, identical to torch."""
    position = jnp.arange(0, max_len, dtype=jnp.float32)[:, None]              # (L, 1)
    div_term = jnp.exp(
        jnp.arange(0, d_model, 2, dtype=jnp.float32) * (-math.log(10000.0) / d_model)
    )                                                                           # (ceil(D/2),)
    pe = jnp.zeros((max_len, d_model), dtype=jnp.float32)
    pe = pe.at[:, 0::2].set(jnp.sin(position * div_term))
    # Guard odd d_model (latent shape bug in the original torch code).
    pe = pe.at[:, 1::2].set(jnp.cos(position * div_term)[:, : d_model // 2])
    # torch: pe.unsqueeze(0).transpose(0, 1) -> (max_len, 1, d_model)
    return pe[:, None, :]


def _as_i32(v: int) -> jnp.int32:
    """Python uint32 constant -> int32 with the same bit pattern."""
    v &= 0xFFFFFFFF
    return jnp.int32(v - (1 << 32) if v >= (1 << 31) else v)


# ----------------------------------------------------------------------------
# Pallas kernels
# ----------------------------------------------------------------------------
def _pe_add_kernel(x_ref, pe_ref, o_ref, *, batch):
    # Eval mode: dropout is identity.
    # x_ref: (bs, B*D), pe_ref: (bs, D).  Tile pe across the batch copies that
    # live along the lane axis (element (s, b*D+d) needs pe[s, d]).
    pe_full = jnp.tile(pe_ref[...], (1, batch))                   # (bs, B*D)
    o_ref[...] = (x_ref[...].astype(jnp.float32) + pe_full).astype(o_ref.dtype)


def _pe_add_dropout_kernel(seed_ref, x_ref, pe_ref, o_ref, *,
                           batch, row_stride, threshold31, scale):
    # Training mode: inverted dropout with a stateless position-based hash.
    bs, bd = x_ref.shape                                          # static block dims

    pe_full = jnp.tile(pe_ref[...], (1, batch))
    y = x_ref[...].astype(jnp.float32) + pe_full

    # Per-element 32-bit counter = seed-mixed global flat index (wraps mod 2^32).
    row0 = pl.program_id(0) * bs
    rows = jax.lax.broadcasted_iota(jnp.int32, (bs, bd), 0) + row0
    cols = jax.lax.broadcasted_iota(jnp.int32, (bs, bd), 1)
    h = rows * jnp.int32(row_stride) + cols + seed_ref[0] * _as_i32(0x9E3779B1)

    # lowbias32 finalizer.  int32 multiplies wrap mod 2^32 (same bits as uint32);
    # logical right shifts are emulated as (arithmetic shift) & mask so every op
    # stays plain signed-int32 (safe in both Mosaic and interpret mode).
    h = h ^ ((h >> 16) & 0xFFFF)
    h = h * _as_i32(0x7FEB352D)
    h = h ^ ((h >> 15) & 0x1FFFF)
    h = h * _as_i32(0x846CA68B)
    h = h ^ ((h >> 16) & 0xFFFF)

    # Keep with P(keep) = 1 - p, exact to 2^-31, via the low 31 hash bits.
    keep = (h & 0x7FFFFFFF) >= threshold31
    o_ref[...] = jnp.where(keep, y * jnp.float32(scale),
                           jnp.float32(0.0)).astype(o_ref.dtype)


# ----------------------------------------------------------------------------
# Wrapper
# ----------------------------------------------------------------------------
def positional_encoding(x, pe, *, dropout_p=0.1, training=False, seed=0,
                        block_seq=None):
    """y = dropout(x + pe[:S]).  x: (S, B, D), pe: (max_len, 1, D) float32."""
    S, B, D = x.shape
    max_len = pe.shape[0]
    assert S <= max_len, "sequence length exceeds positional-encoding table"
    BD = B * D

    # Lane-dense views: collapse (B, D) into the last axis.
    x2 = x.reshape(S, BD)
    pe2 = pe.reshape(max_len, D)

    # Block size: ~2 MiB of x per grid step (amortizes the ~0.35us/step pipeline
    # overhead; double-buffered in+out+pe working set stays well inside every
    # generation's default scoped VMEM), rounded down to a multiple of 8 sublanes.
    if block_seq is None:
        target_bytes = 2 * 1024 * 1024
        block_seq = max(8, target_bytes // max(1, BD * x.dtype.itemsize))
    block_seq = int(min(block_seq, S))
    if block_seq >= 8:
        block_seq = (block_seq // 8) * 8
    else:
        # Tiny sequences (S < 8): single block equal to the full array dims, and
        # slice pe so its block is also full-array (keeps the (8,128) rule happy).
        pe2 = jax.lax.slice_in_dim(pe2, 0, S, axis=0)
        block_seq = S

    # Raise the scoped-VMEM limit only if the 8-row sublane floor forces a block
    # bigger than the ~12 MiB safe-by-default working set (very wide rows).
    ws = 2 * (2 * block_seq * BD * x.dtype.itemsize
              + block_seq * D * pe2.dtype.itemsize)
    vmem_limit = None
    if ws > 12 * 1024 * 1024:
        vmem_limit = int(min(max(ws * 3 // 2, 16 * 1024 * 1024), 48 * 1024 * 1024))

    grid = (pl.cdiv(S, block_seq),)
    x_spec = pl.BlockSpec((block_seq, BD), lambda i, *_: (i, 0))
    pe_spec = pl.BlockSpec((block_seq, D), lambda i, *_: (i, 0))
    o_spec = pl.BlockSpec((block_seq, BD), lambda i, *_: (i, 0))
    out_shape = jax.ShapeDtypeStruct((S, BD), x.dtype)
    compiler_params = pltpu.CompilerParams(
        dimension_semantics=("parallel",),        # steps independent -> megacore OK
        vmem_limit_bytes=vmem_limit,
    )

    if (not training) or dropout_p <= 0.0:
        y2 = pl.pallas_call(
            functools.partial(_pe_add_kernel, batch=B),
            out_shape=out_shape,
            grid_spec=pltpu.PrefetchScalarGridSpec(
                num_scalar_prefetch=0,
                grid=grid,
                in_specs=[x_spec, pe_spec],
                out_specs=o_spec,
            ),
            compiler_params=compiler_params,
        )(x2, pe2)
        return y2.reshape(S, B, D)

    p = float(dropout_p)
    if p >= 1.0:
        return jnp.zeros((S, B, D), x.dtype)
    threshold31 = min(int(round(p * (1 << 31))), (1 << 31) - 1)
    scale = 1.0 / (1.0 - p)
    seed_arr = jnp.asarray([seed], dtype=jnp.int32)

    y2 = pl.pallas_call(
        functools.partial(_pe_add_dropout_kernel, batch=B, row_stride=BD,
                          threshold31=threshold31, scale=scale),
        out_shape=out_shape,
        grid_spec=pltpu.PrefetchScalarGridSpec(
            num_scalar_prefetch=1,
            grid=grid,
            in_specs=[x_spec, pe_spec],
            out_specs=o_spec,
        ),
        compiler_params=compiler_params,
    )(seed_arr, x2, pe2)
    return y2.reshape(S, B, D)


# ----------------------------------------------------------------------------
# Main
# ----------------------------------------------------------------------------
if __name__ == "__main__":
    seq_len, batch, d_model = 24, 2, 32
    max_len = 64  # small table for the synthetic test (torch default 5000)

    key = jax.random.PRNGKey(0)
    x = jax.random.normal(key, (seq_len, batch, d_model), dtype=jnp.float32)
    pe = make_positional_encoding_table(d_model, max_len=max_len)
    y_ref = x + pe[:seq_len]

    # Eval mode (dropout identity), multi-step grid.
    y = jax.block_until_ready(positional_encoding(x, pe, training=False, block_seq=8))
    assert jnp.allclose(y, y_ref, atol=1e-6), "eval-mode mismatch vs reference"

    # Eval mode, auto block (single step) and a partial final block (24 % 16 != 0).
    y2 = jax.block_until_ready(positional_encoding(x, pe, training=False))
    assert jnp.allclose(y2, y_ref, atol=1e-6), "auto-block mismatch vs reference"
    y3 = jax.block_until_ready(positional_encoding(x, pe, training=False, block_seq=16))
    assert jnp.allclose(y3, y_ref, atol=1e-6), "partial-block mismatch vs reference"

    # Tiny-sequence fallback path (S < 8 -> single full-array block).
    y4 = jax.block_until_ready(positional_encoding(x[:5], pe, training=False))
    assert jnp.allclose(y4, y_ref[:5], atol=1e-6), "tiny-sequence mismatch vs reference"

    # Training mode: every element is 0 or (x+pe)/(1-p); drop rate ~ p; the mask
    # depends only on (seed, position) so it must be invariant to tiling.
    p = 0.1
    yd8 = jax.block_until_ready(
        positional_encoding(x, pe, dropout_p=p, training=True, seed=123, block_seq=8))
    yd16 = jax.block_until_ready(
        positional_encoding(x, pe, dropout_p=p, training=True, seed=123, block_seq=16))
    scaled = y_ref / (1.0 - p)
    ok = jnp.logical_or(yd8 == 0.0, jnp.isclose(yd8, scaled, rtol=1e-5, atol=1e-5))
    assert bool(jnp.all(ok)), "dropout output structure mismatch"
    assert jnp.array_equal(yd8, yd16), "dropout mask must be tiling-invariant"
    frac = float(jnp.mean((yd8 == 0.0).astype(jnp.float32)))
    assert 0.01 <= frac <= 0.35, f"dropout rate {frac} far from p={p}"

    print("KERNEL_OK")
</pallas_src>

<mosaic_0001>
module attributes {stable_mosaic.version = 11 : i64} {
  func.func @_pe_add_kernel(%arg0: i32, %arg1: memref<8x64xf32, #tpu.memory_space<vmem>>, %arg2: memref<8x32xf32, #tpu.memory_space<vmem>>, %arg3: memref<8x64xf32, #tpu.memory_space<vmem>>) attributes {dimension_semantics = [#tpu.dimension_semantics<parallel>], iteration_bounds = array<i64: 3>, scalar_prefetch = 0 : i64, scratch_operands = 0 : i64, tpu.core_type = #tpu.core_type<tc>, window_params = [{transform_indices = @transform_0, window_bounds = array<i64: 8, 64>}, {transform_indices = @transform_1, window_bounds = array<i64: 8, 32>}, {transform_indices = @transform_2, window_bounds = array<i64: 8, 64>}]} {
    %c0 = arith.constant 0 : index
    %c0_0 = arith.constant 0 : index
    %0 = vector.load %arg2[%c0, %c0_0] : memref<8x32xf32, #tpu.memory_space<vmem>>, vector<8x32xf32>
    %1 = tpu.concatenate %0, %0 in 1 : vector<8x32xf32>, vector<8x32xf32> -> vector<8x64xf32>
    %c0_1 = arith.constant 0 : index
    %c0_2 = arith.constant 0 : index
    %2 = vector.load %arg1[%c0_1, %c0_2] : memref<8x64xf32, #tpu.memory_space<vmem>>, vector<8x64xf32>
    %3 = arith.addf %2, %1 : vector<8x64xf32>
    %c0_3 = arith.constant 0 : index
    %c0_4 = arith.constant 0 : index
    %4 = vector.load %arg3[%c0_3, %c0_4] : memref<8x64xf32, #tpu.memory_space<vmem>>, vector<8x64xf32>
    tpu.vector_store %arg3[%c0_3, %c0_4], %3 {strides = array<i32>} : memref<8x64xf32, #tpu.memory_space<vmem>>, vector<8x64xf32>,
    return
  }
  func.func @transform_0(%arg0: i32) -> (i32, i32) {
    %c0_i32 = arith.constant 0 : i32
    %c0_i32_0 = arith.constant 0 : i32
    return %arg0, %c0_i32 : i32, i32
  }
  func.func @transform_1(%arg0: i32) -> (i32, i32) {
    %c0_i32 = arith.constant 0 : i32
    %c0_i32_0 = arith.constant 0 : i32
    return %arg0, %c0_i32 : i32, i32
  }
  func.func @transform_2(%arg0: i32) -> (i32, i32) {
    %c0_i32 = arith.constant 0 : i32
    %c0_i32_0 = arith.constant 0 : i32
    return %arg0, %c0_i32 : i32, i32
  }
}

</mosaic_0001>

<bundles_post_ra>
// kernel: tpu_custom_call.1
= control target key start
LH: loop header
LB: loop body
LE: loop exit
PB: predicated region body
PF: predicated region fallthrough
CT: control target
= control target key end

     0   :  { %7 = vsyncpa [#allocation3], 0  ;;  %s489_s0 = inlined_call_operand.vmem [shape: f32[24,64], index: 0, kind: input, shape index: {}]   ;;  %s490_s1 = inlined_call_operand.vmem [shape: f32[64,32], index: 1, kind: input, shape index: {}]   ;;  %s491_s2 = inlined_call_operand.hbm [shape: f32[24,64], index: 2, kind: output, shape index: {}]  }
   0x1   :  { %9 = vsyncpa [#allocation3 + $0x1], 0  ;;  %s384_s9 = smov 0   ;;  %s386_s10 = smov 0  }
   0x2   :  { %s388_s11 = smov 0   ;;  %s390_s12 = smov 0  }
   0x3 LB: > { %s405_s13 = sadd.s32 4294967295, %s365_s12   ;;  %s252_s14 = sadd.s32 4294967294, %s365_s12   ;;  %s365_s12 = sphi %s390_s12, %s497_s12   ;;  %s361_s11 = sphi %s388_s11, %s496_s11   ;;  %s357_s10 = sphi %s386_s10, %s495_s10   ;;  %s353_s9 = sphi %s384_s9, %s494_s9  }
   0x4   : > { %s409_s15 = sadd.s32 1, %s365_s12   ;;  %s74_s16 = sadd.s32 1, %s361_s11 }
   0x5   : > { %s71_s17 = ssub.s32 %s365_s12, %s409_s15  ;;  %p84_p0 = scmp.ne.s32.totalorder %s361_s11, %s357_s10 }
   0x6   : > { %p72_p1 = scmp.eq.s32.totalorder %s71_s17, 0  ;;  %p85_p2 = scmp.eq.s32.totalorder %s405_s13, 2 }
   0x7   : > { %p90_p3 = scmp.ne.s32.totalorder %s357_s10, %s353_s9  ;;  %p91_p4 = scmp.eq.s32.totalorder %s252_s14, 2 }
   0x8   : > { %s420_s18 = scalar_select %p72_p1, %s361_s11, %s74_s16  }
   0x9   : > { %p422_p5 = por %p85_p2, %p84_p0  ;;  %p426_p6 = por %p91_p4, %p90_p3 }
   0xa   : > { %p255_p7 = scmp.ge.s32.totalorder %s365_s12, 1  ;;  %p123_p8 = scmp.lt.s32.totalorder %s365_s12, 4 }
   0xc   : > { %p124_p9 = pnand %p255_p7, %p123_p8 }
   0xd   : > { %p152_p10 = scmp.lt.s32.totalorder (!%p124_p9), %s405_s13, 7  ;;  %s367_s26 = smov (!%p124_p9), 32   ;;  %vm161_vm0 = vcmask (!%p124_p9), 261120   ;;  %vm165_vm1 = vcmask (!%p124_p9), 523264  }
   0xe   : > { %127 = sbr.rel (%p124_p9) target bundleno = 158 (0x9e), region = 28  ;;  %p148_p11 = scmp.lt.s32.totalorder (!%p124_p9), %s405_s13, 2 }
   0xf   : > { %s145_s28 = sand.u32 (!%p124_p9), 1, %s357_s10   ;;  %s260_s6 = sshll.u32 (!%p124_p9), %s405_s13, 7 }
  0x10   : > { %s256_s30 = sshll.u32 (!%p124_p9), %s145_s28, 3  ;;  %s447_s17 = scalar_lea.hbm (!%p124_p9), %s491_s2, %s260_s6 }
  0x11   : > { %s147_s7 = scalar_lea.vmem (!%p124_p9), [#allocation2], %s256_s30 }
  0x12   : > { %s181_s8 = sshll.u32 (!%p124_p9), %s147_s7, 4  ;;  %s449_s8 = int_to_ptr.vmem [resolvable:$true] %s181_s8 }
  0x15   : > { %s153_s21 = scalar_select %p152_p10, %s405_s13, 7 }
  0x16   : > { %s149_s27 = scalar_select %p148_p11, %s405_s13, 2 }
  0x17   : > { %s258_s22 = sshll.u32 %s153_s21, 3  ;;  %s168_s21 = scalar_lea.sflag [#allocation3], %s145_s28 }
  0x18   : > { %s155_s25 = scalar_lea.vmem %s490_s1, %s258_s22  ;;  %s257_s29 = sshll.u32 %s149_s27, 3 }
  0x19   : > { %v156_v0 = vld [vmem:[%s155_s25] sm:$0xff]  ;;  %s151_s5 = scalar_lea.vmem %s489_s0, %s257_s29  ;;  %s303_s22 = scalar_lea.vmem %s449_s8, 128 }
  0x1a   : > { %158 = vrot.lane.b32.xlu0 %v156_v0, %s367_s26  ;;  %v163_v1 = vld [vmem:[%s151_s5] sm:$0xff]  ;;  %p304_p12 = scmp.ne.s32.totalorder %s449_s8, %s303_s22  ;;  %s368_s13 = smov [#allocation2]  }
  0x1b   : > { %s307_s23 = sshll.u32 %s368_s13, 4  ;;  %s308_s23 = int_to_ptr.vmem [resolvable:$false] %s307_s23 }
  0x1c   : > { %p305_p13 = pnand %p304_p12, %p422_p5  ;;  %s309_s24 = scalar_lea.vmem %s308_s23, 256 }
  0x1d   : > { %p310_p1 = scmp.lt.s32.totalorder %s449_s8, %s308_s23  ;;  %p311_p2 = scmp.lt.s32.totalorder %s309_s24, %s303_s22 }
  0x1e   : > { %p306_p0 = pneg %p305_p13 }
  0x1f   : > { %p312_p3 = por %p311_p2, %p310_p1 }
  0x21   : > { %p313_p4 = pnand %p312_p3, %p306_p0 }
  0x8c   : > { %v159_v2 = vpop.permute.xlu0 %158 }
  0x8d   : > { %v162_v3 = vsel %vm161_vm0, %v156_v0, %v159_v2 }
  0x8e   : > { %v164_v4 = vadd.f32 %v163_v1, %v162_v3 }
  0x90   : > { %166 = vst.msk [vmem:[%s147_s7] sm:$0xff] %vm165_vm1, %v164_v4 }
  0x91   : > { %316 = shalt.err (!%p313_p4)
}
  0x92   : > { %s317_s25 = scalar_lea.hbm %s447_s17, 128  ;;  %s321_s28 = scalar_lea.hbm %s491_s2, 384 }
  0x93   : > { %p318_p7 = scmp.ne.s32.totalorder %s447_s17, %s317_s25  ;;  %p322_p10 = scmp.lt.u32.totalorder %s447_s17, %s491_s2 }
  0x94   : > { %p323_p11 = scmp.lt.u32.totalorder %s321_s28, %s317_s25  ;;  %p325_p13 = scmp.lt.u32.totalorder %s317_s25, %s447_s17 }
  0x95   : > { %p319_p8 = pnand %p318_p7, %p422_p5 }
  0x96   : > { %p324_p12 = por %p323_p11, %p322_p10 }
  0x97   : > { %p320_p9 = pneg %p319_p8 }
  0x98   : > { %p326_p0 = por %p325_p13, %p324_p12 }
  0x9a   : > { %p327_p1 = pnand %p326_p0, %p320_p9 }
  0x9c   : > { %330 = shalt.err (!%p327_p1)
}
  0x9d   : > { %263 = dma.vmem_to_hbm [thread:$0]  (%p422_p5), %s449_s8, 128, %s447_s17, %s168_s21  }
  0x9e PF: > { %p269_p2 = scmp.ge.s32.totalorder %s365_s12, 2  ;;  %s193_s3 = sand.u32 1, %s353_s9  }
  0x9f   : > { %s194_s4 = scalar_lea.sflag [#allocation3], %s193_s3 }
  0xa0   : > { %p266_p3 = pnand %p269_p2, %p426_p6 }
  0xa2   : > { %348 = dma.done.wait (!%p266_p3), %s194_s4, 128  }
  0xa3   : > { %350 = vsyncadd (!%p266_p3), %s194_s4, 4294967168  ;;  %p12_p4 = scmp.ge.s32.totalorder %s409_s15, 5   ;;  %s494_s9 = smov %s357_s10 }
  0xa4   : > { %s495_s10 = smov %s361_s11  ;;  %s496_s11 = smov %s420_s18 }
  0xa5   : > { %s497_s12 = smov %s409_s15  ;;  %14 = sbr.rel (!%p12_p4) target bundleno = 3 (0x3), region = 66 }
  0xac   :  { %199 = vsyncpa [#allocation3], 1 }
  0xad   :  { %201 = vsyncpa [#allocation3 + $0x1], 1 }

</bundles_post_ra>
